<compile_context>
chip_gen: v5e
topology: v5e:2x2
jax: 0.10.0
libtpu: 0.0.40
codegen_flags: <defaults>
</compile_context>

<pallas_src>
import functools
import math

import jax
import jax.numpy as jnp
from jax import lax
from jax.experimental import pallas as pl
from jax.experimental.pallas import tpu as pltpu


# ---------------------------------------------------------------------------
# In-kernel helpers
# ---------------------------------------------------------------------------
def _layer_norm(x, gamma, beta, eps=1e-5):
    mu = jnp.mean(x, axis=-1, keepdims=True)
    var = jnp.mean((x - mu) ** 2, axis=-1, keepdims=True)      # biased, like torch LayerNorm
    return (x - mu) * lax.rsqrt(var + eps) * gamma + beta


# ---------------------------------------------------------------------------
# Fused encoder kernel: one grid step = (one batch block, one layer)
# ---------------------------------------------------------------------------
def fused_encoder_kernel(x_ref, wqkv_ref, bqkv_ref, wo_ref,
                         w1_ref, b1_ref, w2_ref, vec_ref, pre_ref,
                         o_ref, xbf_scr, qkvh_scr, attn_scr,
                         *, num_heads, apply_pre_norm):
    layer = pl.program_id(1)
    tB, S, E = o_ref.shape
    H = num_heads
    dh = E // H
    N = tB * S
    nF = w1_ref.shape[0]                                        # number of FFN hidden chunks

    # Layer 0: seed the resident activation block from the kernel input (+ optional pre-norm).
    # Later layers read the activation written by the previous layer; the output block index is
    # constant across the layer axis, so the block stays in VMEM until the batch block changes.
    @pl.when(layer == 0)
    def _seed():
        x0 = x_ref[...].astype(jnp.float32)
        if apply_pre_norm:
            pre = pre_ref[...]                                  # (2, E): gamma, beta
            x0 = _layer_norm(x0, pre[0:1, :], pre[1:2, :])
        o_ref[...] = x0.astype(o_ref.dtype)

    x3 = o_ref[...].astype(jnp.float32)                         # (tB, S, E) resident activation
    xbf_scr[...] = x3.astype(jnp.bfloat16)                      # bf16 copy for the MXU
    x = x3.reshape(N, E)

    vecs = vec_ref[...]                                         # (6, E) f32 packed vectors
    bo, b2 = vecs[0:1, :], vecs[1:2, :]
    g1, be1 = vecs[2:3, :], vecs[3:4, :]
    g2, be2 = vecs[4:5, :], vecs[5:6, :]

    # ---- self attention -------------------------------------------------------------------
    attn_scr[...] = jnp.zeros_like(attn_scr)

    def head_body(h, carry):
        # Per-head fused QKV projection over the whole (tB*S, E) slab (M = tB*S fills the MXU);
        # 1/sqrt(dh) is pre-folded into the Q columns/bias.  Only this head's data is live.
        w_h = wqkv_ref[h]                                       # (E, 3*dh) bf16
        qkv = jnp.dot(xbf_scr[...].reshape(N, E), w_h,
                      preferred_element_type=jnp.float32) + bqkv_ref[h]
        qkvh_scr[...] = qkv.reshape(tB, S, 3 * dh).astype(jnp.bfloat16)
        wo_h = wo_ref[h]                                        # (dh, E) bf16

        def batch_body(b, carry2):
            qkv_b = qkvh_scr[b]                                 # (S, 3*dh) bf16
            qh = qkv_b[:, 0:dh]
            kh = qkv_b[:, dh:2 * dh]
            vh = qkv_b[:, 2 * dh:3 * dh]
            s = lax.dot_general(qh, kh, (((1,), (1,)), ((), ())),
                                preferred_element_type=jnp.float32)        # (S, S)
            s = s - jnp.max(s, axis=-1, keepdims=True)
            p = jnp.exp(s)
            inv = pl.reciprocal(jnp.sum(p, axis=-1, keepdims=True), approx=True)  # EUP slot
            ctx = jnp.dot(p.astype(jnp.bfloat16), vh,
                          preferred_element_type=jnp.float32) * inv        # (S, dh)
            # Out-projection folded per head (K = dh).
            attn_scr[b] = attn_scr[b] + jnp.dot(ctx.astype(jnp.bfloat16), wo_h,
                                                preferred_element_type=jnp.float32)
            return carry2

        return lax.fori_loop(0, tB, batch_body, carry)

    lax.fori_loop(0, H, head_body, 0)
    attn = attn_scr[...].reshape(N, E) + bo

    # ---- residual + norm1 (f32) -----------------------------------------------------------
    y = _layer_norm(x + attn, g1, be1)
    y_bf = y.astype(jnp.bfloat16)

    # ---- feed-forward, tiled over the hidden dim F (no (N, F) f32 intermediate) ------------
    def ffn_body(c, acc):
        h1 = jnp.dot(y_bf, w1_ref[c], preferred_element_type=jnp.float32) + b1_ref[c]
        h1 = jnp.maximum(h1, 0.0).astype(jnp.bfloat16)          # (N, tF)
        return acc + jnp.dot(h1, w2_ref[c], preferred_element_type=jnp.float32)

    ff = lax.fori_loop(0, nF, ffn_body, jnp.zeros((N, E), jnp.float32) + b2)

    # ---- residual + norm2 -> next layer's input (stays resident in VMEM) -------------------
    z = _layer_norm(y + ff, g2, be2)
    o_ref[...] = z.reshape(tB, S, E).astype(o_ref.dtype)


# ---------------------------------------------------------------------------
# Tiling heuristics
# ---------------------------------------------------------------------------
def _pick_ff_tile(F, max_tile=512):
    if F <= max_tile:
        return F
    for t in range(max_tile, 127, -128):
        if F % t == 0:
            return t
    return F  # TODO(synk): ragged F -- fall back to an untiled FFN hidden dim


def _pick_batch_tile(B, S, E, dh, tF, act_itemsize, per_layer_weight_bytes, vmem_budget):
    def working_set(tb):
        n = tb * S
        acts = 4 * tb * S * E * act_itemsize                    # in+out blocks, double-buffered
        weights = 2 * per_layer_weight_bytes                    # double-buffered layer weights
        scratch = n * E * 2 + n * 3 * dh * 2 + n * E * 4        # xbf + qkv-head + attn accumulator
        live = 4 * (4 * n * E + n * 3 * dh + n * tF + 2 * S * S)  # transient f32 values
        return acts + weights + scratch + int(1.25 * live)

    divisors = [d for d in range(1, B + 1) if B % d == 0]
    # Prefer >= 2 parallel blocks so both v7x TensorCores get work (no-op on v5e/v6e).
    prefer = [d for d in divisors if B // d >= 2] or divisors
    for tb in sorted(prefer, reverse=True):
        if working_set(tb) <= vmem_budget:
            return tb
    return 1


# ---------------------------------------------------------------------------
# pallas_call wrapper
# ---------------------------------------------------------------------------
def transformer_encoder_pallas(x_bse, stacked, norm_params, batch_tile=None):
    """x_bse: (B, S, E) batch-major activations.  stacked: prepared per-layer params."""
    B, S, E = x_bse.shape
    L, H = stacked["wqkv_h"].shape[:2]
    dh = E // H
    nF, tF = stacked["w1_c"].shape[1], stacked["w1_c"].shape[3]
    F = nF * tF

    apply_pre_norm = norm_params is not None
    if apply_pre_norm:
        pre = jnp.stack([norm_params["gamma"].reshape(E).astype(jnp.float32),
                         norm_params["beta"].reshape(E).astype(jnp.float32)], axis=0)
    else:
        pre = jnp.stack([jnp.ones((E,), jnp.float32), jnp.zeros((E,), jnp.float32)], axis=0)

    weights = [stacked["wqkv_h"], stacked["bqkv_h"], stacked["wo_h"],
               stacked["w1_c"], stacked["b1_c"], stacked["w2_c"], stacked["vecs"]]
    per_layer_weight_bytes = sum(int(math.prod(w.shape[1:])) * w.dtype.itemsize for w in weights)

    # Generation-aware VMEM budget (v5e/v6e: 128 MiB, v7x: 64 MiB per TensorCore).
    try:
        vmem_cap = int(pltpu.get_tpu_info().vmem_capacity_bytes)
    except Exception:
        vmem_cap = 64 * 1024 * 1024
    if batch_tile is None:
        tB = _pick_batch_tile(B, S, E, dh, tF, x_bse.dtype.itemsize,
                              per_layer_weight_bytes, int(0.75 * vmem_cap))
    else:
        tB = batch_tile
    assert B % tB == 0, "batch tile must divide the batch"
    vmem_limit = int(0.85 * vmem_cap)

    in_specs = [
        pl.BlockSpec((tB, S, E), lambda b, l: (b, 0, 0)),                  # activations
        pl.BlockSpec((None, H, E, 3 * dh), lambda b, l: (l, 0, 0, 0)),     # per-head QKV weight
        pl.BlockSpec((None, H, 1, 3 * dh), lambda b, l: (l, 0, 0, 0)),     # per-head QKV bias
        pl.BlockSpec((None, H, dh, E), lambda b, l: (l, 0, 0, 0)),         # per-head out-proj
        pl.BlockSpec((None, nF, E, tF), lambda b, l: (l, 0, 0, 0)),        # FFN W1 chunks
        pl.BlockSpec((None, nF, 1, tF), lambda b, l: (l, 0, 0, 0)),        # FFN b1 chunks
        pl.BlockSpec((None, nF, tF, E), lambda b, l: (l, 0, 0, 0)),        # FFN W2 chunks
        pl.BlockSpec((None, 6, E), lambda b, l: (l, 0, 0)),                # packed bo/b2/LN vecs
        pl.BlockSpec((2, E), lambda b, l: (0, 0)),                         # encoder pre-norm
    ]

    cost = pl.CostEstimate(
        flops=int(B) * L * (8 * S * E * E + 4 * S * S * E + 4 * S * E * F),
        transcendentals=int(B) * L * H * S * S,
        bytes_accessed=int(2 * B * S * E * x_bse.dtype.itemsize
                           + (B // tB) * L * per_layer_weight_bytes))

    return pl.pallas_call(
        functools.partial(fused_encoder_kernel, num_heads=H, apply_pre_norm=apply_pre_norm),
        out_shape=jax.ShapeDtypeStruct((B, S, E), x_bse.dtype),
        grid=(B // tB, L),                      # layers innermost -> resident activation block
        in_specs=in_specs,
        out_specs=pl.BlockSpec((tB, S, E), lambda b, l: (b, 0, 0)),
        scratch_shapes=[pltpu.VMEM((tB, S, E), jnp.bfloat16),        # bf16 activations
                        pltpu.VMEM((tB, S, 3 * dh), jnp.bfloat16),   # one head's QKV slab
                        pltpu.VMEM((tB, S, E), jnp.float32)],        # attention accumulator
        compiler_params=pltpu.CompilerParams(
            dimension_semantics=("parallel", "arbitrary"),
            vmem_limit_bytes=vmem_limit),
        cost_estimate=cost,
    )(x_bse, *weights, pre)


def transformer_encoder_forward(src_sbe, stacked, norm_params, batch_tile=None):
    """src_sbe: (S, B, E) -- PyTorch TransformerEncoder layout. Returns (S, B, E)."""
    x = jnp.transpose(src_sbe, (1, 0, 2))                 # -> (B, S, E) batch-major
    y = transformer_encoder_pallas(x, stacked, norm_params, batch_tile=batch_tile)
    return jnp.transpose(y, (1, 0, 2))                    # -> (S, B, E)


# ---------------------------------------------------------------------------
# Parameter init (torch nn.TransformerEncoderLayer shapes) + kernel-side prep
# ---------------------------------------------------------------------------
def init_layer_params(key, d_model, dim_ff):
    ks = jax.random.split(key, 12)

    def w(k, shape, fan_in):
        return jax.random.normal(k, shape, jnp.float32) / jnp.sqrt(float(fan_in))

    return dict(
        wqkv=w(ks[0], (3 * d_model, d_model), d_model),   # in_proj_weight (3E, E)
        bqkv=w(ks[1], (3 * d_model,), d_model),
        wo=w(ks[2], (d_model, d_model), d_model),         # out_proj.weight (E, E)
        bo=w(ks[3], (d_model,), d_model),
        w1=w(ks[4], (dim_ff, d_model), d_model),          # linear1.weight (F, E)
        b1=w(ks[5], (dim_ff,), d_model),
        w2=w(ks[6], (d_model, dim_ff), dim_ff),           # linear2.weight (E, F)
        b2=w(ks[7], (d_model,), dim_ff),
        g1=1.0 + 0.1 * jax.random.normal(ks[8], (d_model,), jnp.float32),    # norm1.weight
        be1=0.1 * jax.random.normal(ks[9], (d_model,), jnp.float32),         # norm1.bias
        g2=1.0 + 0.1 * jax.random.normal(ks[10], (d_model,), jnp.float32),   # norm2.weight
        be2=0.1 * jax.random.normal(ks[11], (d_model,), jnp.float32),        # norm2.bias
    )


def prepare_stacked_params(layer_params, d_model, num_heads, dim_ff, ff_tile=None):
    """Stack per-layer params on a leading layer axis in kernel-friendly layouts:
       * in_proj regrouped per head to (L, H, E, 3*dh) / (L, H, 1, 3*dh), Q part pre-scaled
         by 1/sqrt(dh), bf16 weights;
       * out_proj as (L, H, dh, E) bf16;
       * FFN weights chunked over the hidden dim to (L, nF, E, tF) / (L, nF, tF, E) bf16;
       * the six E-sized vectors (bo, b2, LN1/LN2 gamma/beta) packed into one (L, 6, E) f32."""
    E, H = d_model, num_heads
    assert E % H == 0
    dh = E // H
    tF = ff_tile if ff_tile is not None else _pick_ff_tile(dim_ff)
    assert dim_ff % tF == 0
    nF = dim_ff // tF
    qscale = jnp.concatenate([jnp.full((dh,), 1.0 / math.sqrt(dh), jnp.float32),
                              jnp.ones((2 * dh,), jnp.float32)])          # per-head (3*dh,)

    def prep(p):
        wqkv_t = p["wqkv"].T                                               # (E, 3E)
        wqkv_h = wqkv_t.reshape(E, 3, H, dh).transpose(2, 0, 1, 3).reshape(H, E, 3 * dh)
        wqkv_h = wqkv_h * qscale[None, None, :]
        bqkv_h = (p["bqkv"].reshape(3, H, dh).transpose(1, 0, 2).reshape(H, 1, 3 * dh)
                  * qscale[None, None, :])
        return dict(
            wqkv_h=wqkv_h.astype(jnp.bfloat16),
            bqkv_h=bqkv_h.astype(jnp.float32),
            wo_h=p["wo"].T.reshape(H, dh, E).astype(jnp.bfloat16),
            w1_c=p["w1"].T.reshape(E, nF, tF).transpose(1, 0, 2).astype(jnp.bfloat16),
            b1_c=p["b1"].reshape(nF, 1, tF).astype(jnp.float32),
            w2_c=p["w2"].T.reshape(nF, tF, E).astype(jnp.bfloat16),
            vecs=jnp.stack([p["bo"], p["b2"], p["g1"], p["be1"], p["g2"], p["be2"]],
                           axis=0).astype(jnp.float32),
        )

    preps = [prep(p) for p in layer_params]
    return {k: jnp.stack([pp[k] for pp in preps], axis=0) for k in preps[0]}


# ---------------------------------------------------------------------------
# Pure-JAX f32 reference (torch math) for the correctness check
# ---------------------------------------------------------------------------
def _ref_ln(x, g, b, eps=1e-5):
    mu = jnp.mean(x, axis=-1, keepdims=True)
    var = jnp.mean((x - mu) ** 2, axis=-1, keepdims=True)
    return (x - mu) / jnp.sqrt(var + eps) * g + b


def ref_forward(src_sbe, layer_params, norm_params, num_heads):
    x = jnp.transpose(src_sbe, (1, 0, 2))                 # (B, S, E)
    if norm_params is not None:
        x = _ref_ln(x, norm_params["gamma"], norm_params["beta"])
    B, S, E = x.shape
    dh = E // num_heads
    for p in layer_params:
        qkv = x @ p["wqkv"].T + p["bqkv"]
        q, k, v = qkv[..., :E], qkv[..., E:2 * E], qkv[..., 2 * E:]
        heads = []
        for h in range(num_heads):
            qh = q[..., h * dh:(h + 1) * dh] / math.sqrt(dh)
            kh = k[..., h * dh:(h + 1) * dh]
            vh = v[..., h * dh:(h + 1) * dh]
            s = jnp.einsum("bqd,bkd->bqk", qh, kh)
            pw = jax.nn.softmax(s, axis=-1)
            heads.append(jnp.einsum("bqk,bkd->bqd", pw, vh))
        a = jnp.concatenate(heads, axis=-1) @ p["wo"].T + p["bo"]
        y = _ref_ln(x + a, p["g1"], p["be1"])
        ff = jnp.maximum(y @ p["w1"].T + p["b1"], 0.0) @ p["w2"].T + p["b2"]
        x = _ref_ln(y + ff, p["g2"], p["be2"])
    return jnp.transpose(x, (1, 0, 2))


# ---------------------------------------------------------------------------
if __name__ == "__main__":
    S, B, E = 8, 2, 32            # seq, batch, d_model
    NHEAD, DIM_FF, NUM_LAYERS = 4, 64, 2

    root = jax.random.PRNGKey(0)
    k_src, k_layers, k_n1, k_n2 = jax.random.split(root, 4)
    src = jax.random.normal(k_src, (S, B, E), jnp.float32)

    layer_keys = jax.random.split(k_layers, NUM_LAYERS)
    layer_params = [init_layer_params(k, E, DIM_FF) for k in layer_keys]
    norm_params = {"gamma": 1.0 + 0.1 * jax.random.normal(k_n1, (E,), jnp.float32),
                   "beta": 0.1 * jax.random.normal(k_n2, (E,), jnp.float32)}
    stacked = prepare_stacked_params(layer_params, E, NHEAD, DIM_FF)

    out = transformer_encoder_forward(src, stacked, norm_params)
    out = jax.block_until_ready(out)

    ref = ref_forward(src, layer_params, norm_params, NHEAD)
    assert out.shape == (S, B, E)
    err = float(jnp.max(jnp.abs(out - ref)))
    # bf16 MXU operands + approx reciprocal vs. a pure-f32 reference; tolerance tightened vs.
    # the previous version so structural bugs (mis-sliced heads, wrong LN params) cannot pass.
    assert jnp.allclose(out, ref, atol=5e-2, rtol=5e-2), (
        f"Pallas output mismatch vs reference (max abs err {err})")

    print("KERNEL_OK")
</pallas_src>

<mosaic_0001>
module attributes {stable_mosaic.version = 11 : i64} {
  func.func @fused_encoder_kernel(%arg0: i32, %arg1: i32, %arg2: memref<1x8x32xf32, #tpu.memory_space<vmem>>, %arg3: memref<1x4x32x24xbf16, #tpu.memory_space<vmem>>, %arg4: memref<1x4x1x24xf32, #tpu.memory_space<vmem>>, %arg5: memref<1x4x8x32xbf16, #tpu.memory_space<vmem>>, %arg6: memref<1x1x32x64xbf16, #tpu.memory_space<vmem>>, %arg7: memref<1x1x1x64xf32, #tpu.memory_space<vmem>>, %arg8: memref<1x1x64x32xbf16, #tpu.memory_space<vmem>>, %arg9: memref<1x6x32xf32, #tpu.memory_space<vmem>>, %arg10: memref<2x32xf32, #tpu.memory_space<vmem>>, %arg11: memref<1x8x32xf32, #tpu.memory_space<vmem>>, %arg12: memref<1x8x32xbf16, #tpu.memory_space<vmem>>, %arg13: memref<1x8x24xbf16, #tpu.memory_space<vmem>>, %arg14: memref<1x8x32xf32, #tpu.memory_space<vmem>>) attributes {dimension_semantics = [#tpu.dimension_semantics<parallel>, #tpu.dimension_semantics<arbitrary>], iteration_bounds = array<i64: 2, 2>, scalar_prefetch = 0 : i64, scratch_operands = 3 : i64, tpu.core_type = #tpu.core_type<tc>, window_params = [{transform_indices = @transform_0, window_bounds = array<i64: 1, 8, 32>}, {transform_indices = @transform_1, window_bounds = array<i64: 1, 4, 32, 24>}, {transform_indices = @transform_2, window_bounds = array<i64: 1, 4, 1, 24>}, {transform_indices = @transform_3, window_bounds = array<i64: 1, 4, 8, 32>}, {transform_indices = @transform_4, window_bounds = array<i64: 1, 1, 32, 64>}, {transform_indices = @transform_5, window_bounds = array<i64: 1, 1, 1, 64>}, {transform_indices = @transform_6, window_bounds = array<i64: 1, 1, 64, 32>}, {transform_indices = @transform_7, window_bounds = array<i64: 1, 6, 32>}, {pipeline_mode = #tpu.pipeline_mode<synchronous>, transform_indices = @transform_8, window_bounds = array<i64: 2, 32>}, {transform_indices = @transform_9, window_bounds = array<i64: 1, 8, 32>}]} {
    %c0_i32 = arith.constant 0 : i32
    %0 = arith.cmpi eq, %arg1, %c0_i32 : i32
    %1 = arith.extui %0 : i1 to i32
    %c0_i32_0 = arith.constant 0 : i32
    %2 = arith.cmpi ne, %1, %c0_i32_0 : i32
    scf.if %2 {
      %c0_45 = arith.constant 0 : index
      %c0_46 = arith.constant 0 : index
      %c0_47 = arith.constant 0 : index
      %91 = vector.load %arg2[%c0_45, %c0_46, %c0_47] : memref<1x8x32xf32, #tpu.memory_space<vmem>>, vector<1x8x32xf32>
      %c0_48 = arith.constant 0 : index
      %c0_49 = arith.constant 0 : index
      %92 = vector.load %arg10[%c0_48, %c0_49] : memref<2x32xf32, #tpu.memory_space<vmem>>, vector<2x32xf32>
      %93 = vector.extract_strided_slice %92 {offsets = [0, 0], sizes = [1, 32], strides = [1, 1]} : vector<2x32xf32> to vector<1x32xf32>
      %94 = vector.extract_strided_slice %92 {offsets = [1, 0], sizes = [1, 32], strides = [1, 1]} : vector<2x32xf32> to vector<1x32xf32>
      %cst_50 = arith.constant dense<0.000000e+00> : vector<1x8xf32>
      %95 = vector.multi_reduction <add>, %91, %cst_50 [2] : vector<1x8x32xf32> to vector<1x8xf32>
      %96 = vector.shape_cast %95 : vector<1x8xf32> to vector<1x8x1xf32>
      %cst_51 = arith.constant 3.200000e+01 : f32
      %97 = vector.broadcast %cst_51 : f32 to vector<1x8x1xf32>
      %98 = arith.divf %96, %97 : vector<1x8x1xf32>
      %99 = vector.broadcast %98 : vector<1x8x1xf32> to vector<1x8x32xf32>
      %100 = arith.subf %91, %99 : vector<1x8x32xf32>
      %101 = arith.mulf %100, %100 : vector<1x8x32xf32>
      %cst_52 = arith.constant dense<0.000000e+00> : vector<1x8xf32>
      %102 = vector.multi_reduction <add>, %101, %cst_52 [2] : vector<1x8x32xf32> to vector<1x8xf32>
      %103 = vector.shape_cast %102 : vector<1x8xf32> to vector<1x8x1xf32>
      %cst_53 = arith.constant 3.200000e+01 : f32
      %104 = vector.broadcast %cst_53 : f32 to vector<1x8x1xf32>
      %105 = arith.divf %103, %104 : vector<1x8x1xf32>
      %106 = vector.broadcast %98 : vector<1x8x1xf32> to vector<1x8x32xf32>
      %107 = arith.subf %91, %106 : vector<1x8x32xf32>
      %cst_54 = arith.constant 9.99999974E-6 : f32
      %108 = vector.broadcast %cst_54 : f32 to vector<1x8x1xf32>
      %109 = arith.addf %105, %108 : vector<1x8x1xf32>
      %110 = math.rsqrt %109 : vector<1x8x1xf32>
      %111 = vector.broadcast %110 : vector<1x8x1xf32> to vector<1x8x32xf32>
      %112 = arith.mulf %107, %111 : vector<1x8x32xf32>
      %113 = vector.shape_cast %93 : vector<1x32xf32> to vector<1x1x32xf32>
      %114 = vector.broadcast %113 : vector<1x1x32xf32> to vector<1x8x32xf32>
      %115 = arith.mulf %112, %114 : vector<1x8x32xf32>
      %116 = vector.shape_cast %94 : vector<1x32xf32> to vector<1x1x32xf32>
      %117 = vector.broadcast %116 : vector<1x1x32xf32> to vector<1x8x32xf32>
      %118 = arith.addf %115, %117 : vector<1x8x32xf32>
      %c0_55 = arith.constant 0 : index
      %c0_56 = arith.constant 0 : index
      %c0_57 = arith.constant 0 : index
      %119 = vector.load %arg11[%c0_55, %c0_56, %c0_57] : memref<1x8x32xf32, #tpu.memory_space<vmem>>, vector<1x8x32xf32>
      tpu.vector_store %arg11[%c0_55, %c0_56, %c0_57], %118 {strides = array<i32>} : memref<1x8x32xf32, #tpu.memory_space<vmem>>, vector<1x8x32xf32>,
    } else {
    }
    %c0 = arith.constant 0 : index
    %c0_1 = arith.constant 0 : index
    %c0_2 = arith.constant 0 : index
    %3 = vector.load %arg11[%c0, %c0_1, %c0_2] : memref<1x8x32xf32, #tpu.memory_space<vmem>>, vector<1x8x32xf32>
    %4 = arith.truncf %3 : vector<1x8x32xf32> to vector<1x8x32xbf16>
    %c0_3 = arith.constant 0 : index
    %c0_4 = arith.constant 0 : index
    %c0_5 = arith.constant 0 : index
    %5 = vector.load %arg12[%c0_3, %c0_4, %c0_5] : memref<1x8x32xbf16, #tpu.memory_space<vmem>>, vector<1x8x32xbf16>
    tpu.vector_store %arg12[%c0_3, %c0_4, %c0_5], %4 {strides = array<i32>} : memref<1x8x32xbf16, #tpu.memory_space<vmem>>, vector<1x8x32xbf16>,
    %6 = vector.shape_cast %3 : vector<1x8x32xf32> to vector<8x32xf32>
    %c0_6 = arith.constant 0 : index
    %c0_7 = arith.constant 0 : index
    %c0_8 = arith.constant 0 : index
    %7 = vector.load %arg9[%c0_6, %c0_7, %c0_8] : memref<1x6x32xf32, #tpu.memory_space<vmem>>, vector<1x6x32xf32>
    %8 = vector.shape_cast %7 : vector<1x6x32xf32> to vector<6x32xf32>
    %9 = vector.extract_strided_slice %8 {offsets = [0, 0], sizes = [1, 32], strides = [1, 1]} : vector<6x32xf32> to vector<1x32xf32>
    %10 = vector.extract_strided_slice %8 {offsets = [1, 0], sizes = [1, 32], strides = [1, 1]} : vector<6x32xf32> to vector<1x32xf32>
    %11 = vector.extract_strided_slice %8 {offsets = [2, 0], sizes = [1, 32], strides = [1, 1]} : vector<6x32xf32> to vector<1x32xf32>
    %12 = vector.extract_strided_slice %8 {offsets = [3, 0], sizes = [1, 32], strides = [1, 1]} : vector<6x32xf32> to vector<1x32xf32>
    %13 = vector.extract_strided_slice %8 {offsets = [4, 0], sizes = [1, 32], strides = [1, 1]} : vector<6x32xf32> to vector<1x32xf32>
    %14 = vector.extract_strided_slice %8 {offsets = [5, 0], sizes = [1, 32], strides = [1, 1]} : vector<6x32xf32> to vector<1x32xf32>
    %cst = arith.constant 0.000000e+00 : f32
    %15 = vector.broadcast %cst : f32 to vector<1x8x32xf32>
    %c0_9 = arith.constant 0 : index
    %c0_10 = arith.constant 0 : index
    %c0_11 = arith.constant 0 : index
    %16 = vector.load %arg14[%c0_9, %c0_10, %c0_11] : memref<1x8x32xf32, #tpu.memory_space<vmem>>, vector<1x8x32xf32>
    tpu.vector_store %arg14[%c0_9, %c0_10, %c0_11], %15 {strides = array<i32>} : memref<1x8x32xf32, #tpu.memory_space<vmem>>, vector<1x8x32xf32>,
    %c0_i32_12 = arith.constant 0 : i32
    %c4_i32 = arith.constant 4 : i32
    %17 = arith.addi %c0_i32_12, %c4_i32 : i32
    %c1_i32 = arith.constant 1 : i32
    scf.for %arg15 = %c0_i32_12 to %17 step %c1_i32  : i32 {
      %c0_45 = arith.constant 0 : index
      %91 = arith.index_cast %arg15 : i32 to index
      %c0_46 = arith.constant 0 : index
      %c0_47 = arith.constant 0 : index
      %92 = vector.load %arg3[%c0_45, %91, %c0_46, %c0_47] : memref<1x4x32x24xbf16, #tpu.memory_space<vmem>>, vector<1x1x32x24xbf16>
      %93 = vector.shape_cast %92 : vector<1x1x32x24xbf16> to vector<32x24xbf16>
      %c0_48 = arith.constant 0 : index
      %c0_49 = arith.constant 0 : index
      %c0_50 = arith.constant 0 : index
      %94 = vector.load %arg12[%c0_48, %c0_49, %c0_50] : memref<1x8x32xbf16, #tpu.memory_space<vmem>>, vector<1x8x32xbf16>
      %95 = vector.shape_cast %94 : vector<1x8x32xbf16> to vector<8x32xbf16>
      %cst_51 = arith.constant dense<0.000000e+00> : vector<8x24xf32>
      %96 = tpu.matmul %95, %93, %cst_51 {dimension_numbers = #tpu.dot_dimension_numbers<[1], [0], [0], [1], [0, 0, 1, 1], [], []>} : vector<8x32xbf16>, vector<32x24xbf16>, vector<8x24xf32> -> vector<8x24xf32>
      %c0_52 = arith.constant 0 : index
      %97 = arith.index_cast %arg15 : i32 to index
      %c0_53 = arith.constant 0 : index
      %c0_54 = arith.constant 0 : index
      %98 = vector.load %arg4[%c0_52, %97, %c0_53, %c0_54] : memref<1x4x1x24xf32, #tpu.memory_space<vmem>>, vector<1x1x1x24xf32>
      %99 = vector.shape_cast %98 : vector<1x1x1x24xf32> to vector<1x24xf32>
      %100 = vector.broadcast %99 : vector<1x24xf32> to vector<8x24xf32>
      %101 = arith.addf %96, %100 : vector<8x24xf32>
      %102 = vector.shape_cast %101 : vector<8x24xf32> to vector<1x8x24xf32>
      %103 = arith.truncf %102 : vector<1x8x24xf32> to vector<1x8x24xbf16>
      %c0_55 = arith.constant 0 : index
      %c0_56 = arith.constant 0 : index
      %c0_57 = arith.constant 0 : index
      %104 = vector.load %arg13[%c0_55, %c0_56, %c0_57] : memref<1x8x24xbf16, #tpu.memory_space<vmem>>, vector<1x8x24xbf16>
      tpu.vector_store %arg13[%c0_55, %c0_56, %c0_57], %103 {strides = array<i32>} : memref<1x8x24xbf16, #tpu.memory_space<vmem>>, vector<1x8x24xbf16>,
      %c0_58 = arith.constant 0 : index
      %105 = arith.index_cast %arg15 : i32 to index
      %c0_59 = arith.constant 0 : index
      %c0_60 = arith.constant 0 : index
      %106 = vector.load %arg5[%c0_58, %105, %c0_59, %c0_60] : memref<1x4x8x32xbf16, #tpu.memory_space<vmem>>, vector<1x1x8x32xbf16>
      %107 = vector.shape_cast %106 : vector<1x1x8x32xbf16> to vector<8x32xbf16>
      %c0_i32_61 = arith.constant 0 : i32
      %108 = arith.index_cast %c0_i32_61 : i32 to index
      %c0_62 = arith.constant 0 : index
      %c0_63 = arith.constant 0 : index
      %109 = vector.load %arg13[%108, %c0_62, %c0_63] : memref<1x8x24xbf16, #tpu.memory_space<vmem>>, vector<1x8x24xbf16>
      %110 = vector.shape_cast %109 : vector<1x8x24xbf16> to vector<8x24xbf16>
      %111 = vector.extract_strided_slice %110 {offsets = [0, 0], sizes = [8, 8], strides = [1, 1]} : vector<8x24xbf16> to vector<8x8xbf16>
      %112 = vector.extract_strided_slice %110 {offsets = [0, 8], sizes = [8, 8], strides = [1, 1]} : vector<8x24xbf16> to vector<8x8xbf16>
      %113 = vector.extract_strided_slice %110 {offsets = [0, 16], sizes = [8, 8], strides = [1, 1]} : vector<8x24xbf16> to vector<8x8xbf16>
      %cst_64 = arith.constant dense<0.000000e+00> : vector<8x8xf32>
      %114 = tpu.matmul %111, %112, %cst_64 {dimension_numbers = #tpu.dot_dimension_numbers<[1], [1], [0], [0], [0, 0, 1, 0], [], []>} : vector<8x8xbf16>, vector<8x8xbf16>, vector<8x8xf32> -> vector<8x8xf32>
      %cst_65 = arith.constant dense<0xFF800000> : vector<8xf32>
      %115 = vector.multi_reduction <maximumf>, %114, %cst_65 [1] : vector<8x8xf32> to vector<8xf32>
      %116 = vector.shape_cast %115 : vector<8xf32> to vector<8x1xf32>
      %117 = vector.broadcast %116 : vector<8x1xf32> to vector<8x8xf32>
      %118 = arith.subf %114, %117 : vector<8x8xf32>
      %119 = math.exp %118 : vector<8x8xf32>
      %cst_66 = arith.constant dense<0.000000e+00> : vector<8xf32>
      %120 = vector.multi_reduction <add>, %119, %cst_66 [1] : vector<8x8xf32> to vector<8xf32>
      %121 = vector.shape_cast %120 : vector<8xf32> to vector<8x1xf32>
      %122 = tpu.reciprocal %121 {approx = true} : vector<8x1xf32> -> vector<8x1xf32>
      %123 = arith.truncf %119 : vector<8x8xf32> to vector<8x8xbf16>
      %cst_67 = arith.constant dense<0.000000e+00> : vector<8x8xf32>
      %124 = tpu.matmul %123, %113, %cst_67 {dimension_numbers = #tpu.dot_dimension_numbers<[1], [0], [0], [1], [0, 0, 1, 1], [], []>} : vector<8x8xbf16>, vector<8x8xbf16>, vector<8x8xf32> -> vector<8x8xf32>
      %125 = vector.broadcast %122 : vector<8x1xf32> to vector<8x8xf32>
      %126 = arith.mulf %124, %125 : vector<8x8xf32>
      %127 = arith.index_cast %c0_i32_61 : i32 to index
      %c0_68 = arith.constant 0 : index
      %c0_69 = arith.constant 0 : index
      %128 = vector.load %arg14[%127, %c0_68, %c0_69] : memref<1x8x32xf32, #tpu.memory_space<vmem>>, vector<1x8x32xf32>
      %129 = vector.shape_cast %128 : vector<1x8x32xf32> to vector<8x32xf32>
      %130 = arith.truncf %126 : vector<8x8xf32> to vector<8x8xbf16>
      %cst_70 = arith.constant dense<0.000000e+00> : vector<8x32xf32>
      %131 = tpu.matmul %130, %107, %cst_70 {dimension_numbers = #tpu.dot_dimension_numbers<[1], [0], [0], [1], [0, 0, 1, 1], [], []>} : vector<8x8xbf16>, vector<8x32xbf16>, vector<8x32xf32> -> vector<8x32xf32>
      %132 = arith.addf %129, %131 : vector<8x32xf32>
      %133 = arith.index_cast %c0_i32_61 : i32 to index
      %c0_71 = arith.constant 0 : index
      %c0_72 = arith.constant 0 : index
      %134 = vector.load %arg14[%133, %c0_71, %c0_72] : memref<1x8x32xf32, #tpu.memory_space<vmem>>, vector<1x8x32xf32>
      %135 = vector.shape_cast %134 : vector<1x8x32xf32> to vector<8x32xf32>
      %136 = vector.shape_cast %132 : vector<8x32xf32> to vector<1x8x32xf32>
      tpu.vector_store %arg14[%133, %c0_71, %c0_72], %136 {strides = array<i32>} : memref<1x8x32xf32, #tpu.memory_space<vmem>>, vector<1x8x32xf32>,
      %c1_i32_73 = arith.constant 1 : i32
    }
    %c4_i32_13 = arith.constant 4 : i32
    %c0_14 = arith.constant 0 : index
    %c0_15 = arith.constant 0 : index
    %c0_16 = arith.constant 0 : index
    %18 = vector.load %arg14[%c0_14, %c0_15, %c0_16] : memref<1x8x32xf32, #tpu.memory_space<vmem>>, vector<1x8x32xf32>
    %19 = vector.shape_cast %18 : vector<1x8x32xf32> to vector<8x32xf32>
    %20 = vector.broadcast %9 : vector<1x32xf32> to vector<8x32xf32>
    %21 = arith.addf %19, %20 : vector<8x32xf32>
    %22 = arith.addf %6, %21 : vector<8x32xf32>
    %cst_17 = arith.constant dense<0.000000e+00> : vector<8xf32>
    %23 = vector.multi_reduction <add>, %22, %cst_17 [1] : vector<8x32xf32> to vector<8xf32>
    %24 = vector.shape_cast %23 : vector<8xf32> to vector<8x1xf32>
    %cst_18 = arith.constant 3.200000e+01 : f32
    %25 = vector.broadcast %cst_18 : f32 to vector<8x1xf32>
    %26 = arith.divf %24, %25 : vector<8x1xf32>
    %27 = vector.broadcast %26 : vector<8x1xf32> to vector<8x32xf32>
    %28 = arith.subf %22, %27 : vector<8x32xf32>
    %29 = arith.mulf %28, %28 : vector<8x32xf32>
    %cst_19 = arith.constant dense<0.000000e+00> : vector<8xf32>
    %30 = vector.multi_reduction <add>, %29, %cst_19 [1] : vector<8x32xf32> to vector<8xf32>
    %31 = vector.shape_cast %30 : vector<8xf32> to vector<8x1xf32>
    %cst_20 = arith.constant 3.200000e+01 : f32
    %32 = vector.broadcast %cst_20 : f32 to vector<8x1xf32>
    %33 = arith.divf %31, %32 : vector<8x1xf32>
    %34 = vector.broadcast %26 : vector<8x1xf32> to vector<8x32xf32>
    %35 = arith.subf %22, %34 : vector<8x32xf32>
    %cst_21 = arith.constant 9.99999974E-6 : f32
    %36 = vector.broadcast %cst_21 : f32 to vector<8x1xf32>
    %37 = arith.addf %33, %36 : vector<8x1xf32>
    %38 = math.rsqrt %37 : vector<8x1xf32>
    %39 = vector.broadcast %38 : vector<8x1xf32> to vector<8x32xf32>
    %40 = arith.mulf %35, %39 : vector<8x32xf32>
    %41 = vector.broadcast %11 : vector<1x32xf32> to vector<8x32xf32>
    %42 = arith.mulf %40, %41 : vector<8x32xf32>
    %43 = vector.broadcast %12 : vector<1x32xf32> to vector<8x32xf32>
    %44 = arith.addf %42, %43 : vector<8x32xf32>
    %45 = arith.truncf %44 : vector<8x32xf32> to vector<8x32xbf16>
    %cst_22 = arith.constant 0.000000e+00 : f32
    %46 = vector.broadcast %cst_22 : f32 to vector<8x32xf32>
    %47 = vector.broadcast %10 : vector<1x32xf32> to vector<8x32xf32>
    %48 = arith.addf %46, %47 : vector<8x32xf32>
    %c0_i32_23 = arith.constant 0 : i32
    %c0_24 = arith.constant 0 : index
    %49 = arith.index_cast %c0_i32_23 : i32 to index
    %c0_25 = arith.constant 0 : index
    %c0_26 = arith.constant 0 : index
    %50 = vector.load %arg6[%c0_24, %49, %c0_25, %c0_26] : memref<1x1x32x64xbf16, #tpu.memory_space<vmem>>, vector<1x1x32x64xbf16>
    %51 = vector.shape_cast %50 : vector<1x1x32x64xbf16> to vector<32x64xbf16>
    %cst_27 = arith.constant dense<0.000000e+00> : vector<8x64xf32>
    %52 = tpu.matmul %45, %51, %cst_27 {dimension_numbers = #tpu.dot_dimension_numbers<[1], [0], [0], [1], [0, 0, 1, 1], [], []>} : vector<8x32xbf16>, vector<32x64xbf16>, vector<8x64xf32> -> vector<8x64xf32>
    %c0_28 = arith.constant 0 : index
    %53 = arith.index_cast %c0_i32_23 : i32 to index
    %c0_29 = arith.constant 0 : index
    %c0_30 = arith.constant 0 : index
    %54 = vector.load %arg7[%c0_28, %53, %c0_29, %c0_30] : memref<1x1x1x64xf32, #tpu.memory_space<vmem>>, vector<1x1x1x64xf32>
    %55 = vector.shape_cast %54 : vector<1x1x1x64xf32> to vector<1x64xf32>
    %56 = vector.broadcast %55 : vector<1x64xf32> to vector<8x64xf32>
    %57 = arith.addf %52, %56 : vector<8x64xf32>
    %cst_31 = arith.constant 0.000000e+00 : f32
    %58 = vector.broadcast %cst_31 : f32 to vector<8x64xf32>
    %59 = arith.maximumf %57, %58 : vector<8x64xf32>
    %60 = arith.truncf %59 : vector<8x64xf32> to vector<8x64xbf16>
    %c0_32 = arith.constant 0 : index
    %61 = arith.index_cast %c0_i32_23 : i32 to index
    %c0_33 = arith.constant 0 : index
    %c0_34 = arith.constant 0 : index
    %62 = vector.load %arg8[%c0_32, %61, %c0_33, %c0_34] : memref<1x1x64x32xbf16, #tpu.memory_space<vmem>>, vector<1x1x64x32xbf16>
    %63 = vector.shape_cast %62 : vector<1x1x64x32xbf16> to vector<64x32xbf16>
    %cst_35 = arith.constant dense<0.000000e+00> : vector<8x32xf32>
    %64 = tpu.matmul %60, %63, %cst_35 {dimension_numbers = #tpu.dot_dimension_numbers<[1], [0], [0], [1], [0, 0, 1, 1], [], []>} : vector<8x64xbf16>, vector<64x32xbf16>, vector<8x32xf32> -> vector<8x32xf32>
    %65 = arith.addf %48, %64 : vector<8x32xf32>
    %c1_i32_36 = arith.constant 1 : i32
    %66 = arith.addf %44, %65 : vector<8x32xf32>
    %cst_37 = arith.constant dense<0.000000e+00> : vector<8xf32>
    %67 = vector.multi_reduction <add>, %66, %cst_37 [1] : vector<8x32xf32> to vector<8xf32>
    %68 = vector.shape_cast %67 : vector<8xf32> to vector<8x1xf32>
    %cst_38 = arith.constant 3.200000e+01 : f32
    %69 = vector.broadcast %cst_38 : f32 to vector<8x1xf32>
    %70 = arith.divf %68, %69 : vector<8x1xf32>
    %71 = vector.broadcast %70 : vector<8x1xf32> to vector<8x32xf32>
    %72 = arith.subf %66, %71 : vector<8x32xf32>
    %73 = arith.mulf %72, %72 : vector<8x32xf32>
    %cst_39 = arith.constant dense<0.000000e+00> : vector<8xf32>
    %74 = vector.multi_reduction <add>, %73, %cst_39 [1] : vector<8x32xf32> to vector<8xf32>
    %75 = vector.shape_cast %74 : vector<8xf32> to vector<8x1xf32>
    %cst_40 = arith.constant 3.200000e+01 : f32
    %76 = vector.broadcast %cst_40 : f32 to vector<8x1xf32>
    %77 = arith.divf %75, %76 : vector<8x1xf32>
    %78 = vector.broadcast %70 : vector<8x1xf32> to vector<8x32xf32>
    %79 = arith.subf %66, %78 : vector<8x32xf32>
    %cst_41 = arith.constant 9.99999974E-6 : f32
    %80 = vector.broadcast %cst_41 : f32 to vector<8x1xf32>
    %81 = arith.addf %77, %80 : vector<8x1xf32>
    %82 = math.rsqrt %81 : vector<8x1xf32>
    %83 = vector.broadcast %82 : vector<8x1xf32> to vector<8x32xf32>
    %84 = arith.mulf %79, %83 : vector<8x32xf32>
    %85 = vector.broadcast %13 : vector<1x32xf32> to vector<8x32xf32>
    %86 = arith.mulf %84, %85 : vector<8x32xf32>
    %87 = vector.broadcast %14 : vector<1x32xf32> to vector<8x32xf32>
    %88 = arith.addf %86, %87 : vector<8x32xf32>
    %89 = vector.shape_cast %88 : vector<8x32xf32> to vector<1x8x32xf32>
    %c0_42 = arith.constant 0 : index
    %c0_43 = arith.constant 0 : index
    %c0_44 = arith.constant 0 : index
    %90 = vector.load %arg11[%c0_42, %c0_43, %c0_44] : memref<1x8x32xf32, #tpu.memory_space<vmem>>, vector<1x8x32xf32>
    tpu.vector_store %arg11[%c0_42, %c0_43, %c0_44], %89 {strides = array<i32>} : memref<1x8x32xf32, #tpu.memory_space<vmem>>, vector<1x8x32xf32>,
    return
  }
  func.func @transform_0(%arg0: i32, %arg1: i32) -> (i32, i32, i32) {
    %c0_i32 = arith.constant 0 : i32
    %c0_i32_0 = arith.constant 0 : i32
    %c0_i32_1 = arith.constant 0 : i32
    return %arg0, %c0_i32, %c0_i32_0 : i32, i32, i32
  }
  func.func @transform_1(%arg0: i32, %arg1: i32) -> (i32, i32, i32, i32) {
    %c0_i32 = arith.constant 0 : i32
    %c0_i32_0 = arith.constant 0 : i32
    %c0_i32_1 = arith.constant 0 : i32
    %c0_i32_2 = arith.constant 0 : i32
    return %arg1, %c0_i32, %c0_i32_0, %c0_i32_1 : i32, i32, i32, i32
  }
  func.func @transform_2(%arg0: i32, %arg1: i32) -> (i32, i32, i32, i32) {
    %c0_i32 = arith.constant 0 : i32
    %c0_i32_0 = arith.constant 0 : i32
    %c0_i32_1 = arith.constant 0 : i32
    %c0_i32_2 = arith.constant 0 : i32
    return %arg1, %c0_i32, %c0_i32_0, %c0_i32_1 : i32, i32, i32, i32
  }
  func.func @transform_3(%arg0: i32, %arg1: i32) -> (i32, i32, i32, i32) {
    %c0_i32 = arith.constant 0 : i32
    %c0_i32_0 = arith.constant 0 : i32
    %c0_i32_1 = arith.constant 0 : i32
    %c0_i32_2 = arith.constant 0 : i32
    return %arg1, %c0_i32, %c0_i32_0, %c0_i32_1 : i32, i32, i32, i32
  }
  func.func @transform_4(%arg0: i32, %arg1: i32) -> (i32, i32, i32, i32) {
    %c0_i32 = arith.constant 0 : i32
    %c0_i32_0 = arith.constant 0 : i32
    %c0_i32_1 = arith.constant 0 : i32
    %c0_i32_2 = arith.constant 0 : i32
    return %arg1, %c0_i32, %c0_i32_0, %c0_i32_1 : i32, i32, i32, i32
  }
  func.func @transform_5(%arg0: i32, %arg1: i32) -> (i32, i32, i32, i32) {
    %c0_i32 = arith.constant 0 : i32
    %c0_i32_0 = arith.constant 0 : i32
    %c0_i32_1 = arith.constant 0 : i32
    %c0_i32_2 = arith.constant 0 : i32
    return %arg1, %c0_i32, %c0_i32_0, %c0_i32_1 : i32, i32, i32, i32
  }
  func.func @transform_6(%arg0: i32, %arg1: i32) -> (i32, i32, i32, i32) {
    %c0_i32 = arith.constant 0 : i32
    %c0_i32_0 = arith.constant 0 : i32
    %c0_i32_1 = arith.constant 0 : i32
    %c0_i32_2 = arith.constant 0 : i32
    return %arg1, %c0_i32, %c0_i32_0, %c0_i32_1 : i32, i32, i32, i32
  }
  func.func @transform_7(%arg0: i32, %arg1: i32) -> (i32, i32, i32) {
    %c0_i32 = arith.constant 0 : i32
    %c0_i32_0 = arith.constant 0 : i32
    %c0_i32_1 = arith.constant 0 : i32
    return %arg1, %c0_i32, %c0_i32_0 : i32, i32, i32
  }
  func.func @transform_8(%arg0: i32, %arg1: i32) -> (i32, i32) {
    %c0_i32 = arith.constant 0 : i32
    %c0_i32_0 = arith.constant 0 : i32
    %c0_i32_1 = arith.constant 0 : i32
    return %c0_i32, %c0_i32_0 : i32, i32
  }
  func.func @transform_9(%arg0: i32, %arg1: i32) -> (i32, i32, i32) {
    %c0_i32 = arith.constant 0 : i32
    %c0_i32_0 = arith.constant 0 : i32
    %c0_i32_1 = arith.constant 0 : i32
    return %arg0, %c0_i32, %c0_i32_0 : i32, i32, i32
  }
}

</mosaic_0001>

<bundles_post_ra>
// kernel: tpu_custom_call.1
= control target key start
LH: loop header
LB: loop body
LE: loop exit
PB: predicated region body
PF: predicated region fallthrough
CT: control target
= control target key end

     0   :  { %s1554_s0 = inlined_call_operand.vmem [shape: f32[2,8,32], index: 0, kind: input, shape index: {}]   ;;  %s1555_s1 = inlined_call_operand.vmem [shape: bf16[2,4,32,24], index: 1, kind: input, shape index: {}]   ;;  %s1556_s2 = inlined_call_operand.vmem [shape: f32[2,4,1,24], index: 2, kind: input, shape index: {}]   ;;  %s1557_s3 = inlined_call_operand.vmem [shape: bf16[2,4,8,32], index: 3, kind: input, shape index: {}]   ;;  %s1558_s4 = inlined_call_operand.vmem [shape: bf16[2,1,32,64], index: 4, kind: input, shape index: {}]   ;;  %s1559_s5 = inlined_call_operand.vmem [shape: f32[2,1,1,64], index: 5, kind: input, shape index: {}]   ;;  %s1560_s6 = inlined_call_operand.vmem [shape: bf16[2,1,64,32], index: 6, kind: input, shape index: {}]   ;;  %s1561_s7 = inlined_call_operand.vmem [shape: f32[2,6,32], index: 7, kind: input, shape index: {}]   ;;  %s1562_s8 = inlined_call_operand.vmem [shape: f32[2,32], index: 8, kind: input, shape index: {}]   ;;  %s1563_s9 = inlined_call_operand.hbm [shape: f32[2,8,32], index: 9, kind: output, shape index: {}]  }
   0x1   :  { %1575 = sst [smem:[#allocation18_spill]] %s1554_s0 }
   0x2   :  { %1576 = sst [smem:[#allocation19_spill]] %s1555_s1 }
   0x3   :  { %1577 = sst [smem:[#allocation20_spill]] %s1556_s2 }
   0x4   :  { %1578 = sst [smem:[#allocation21_spill]] %s1557_s3 }
   0x5   :  { %14 = vsyncpa [#allocation6], 0 }
   0x6   :  { %16 = vsyncpa [#allocation6 + $0x1], 0  ;;  %s1321_s30 = smov 0   ;;  %s1323_s10 = smov 0  }
   0x7   :  { %s1325_s11 = smov 0   ;;  %s1327_s12 = smov 0  }
   0x8   :  { %s1329_s13 = smov 0   ;;  %s1331_s14 = smov 0  }
   0x9   :  { %s1333_s15 = smov 0   ;;  %s1335_s16 = smov 0  }
   0xa LB: > { %1579 = sst [smem:[#allocation8_spill]] %s1232_s30  ;;  %s986_s17 = sadd.s32 4294967295, %s1260_s16   ;;  %s1260_s16 = sphi %s1335_s16, %s22_s16   ;;  %s1256_s15 = sphi %s1333_s15, %s1608_s15   ;;  %s1252_s14 = sphi %s1331_s14, %s1604_s14   ;;  %s1248_s13 = sphi %s1329_s13, %s1603_s13   ;;  %s1244_s12 = sphi %s1327_s12, %s1602_s12   ;;  %s1240_s11 = sphi %s1325_s11, %s1601_s11   ;;  %s1236_s10 = sphi %s1323_s10, %s1607_s10   ;;  %s1232_s30 = sphi %s1321_s30, %s1606_s30  }
   0xb   : > { %1580 = sst [smem:[#allocation9_spill]] %s1240_s11  ;;  %s987_s18 = sadd.s32 4294967294, %s1260_s16  }
   0xc   : > { %1581 = sst [smem:[#allocation10_spill]] %s1252_s14  ;;  %s31_s19 = sadd.s32 1, %s1252_s14 }
   0xd   : > { %1582 = sst [smem:[#allocation11_spill]] %s1256_s15  ;;  %p32_p0 = scmp.ge.s32.totalorder %s31_s19, 2 }
   0xe   : > { %1583 = sst [smem:[#allocation12_spill]] %s1260_s16  ;;  %s34_s20 = sadd.s32 1, %s1256_s15 }
   0xf   : > { %p280_p1 = scmp.ne.s32.totalorder %s1240_s11, %s1236_s10  ;;  %p281_p2 = scmp.eq.s32.totalorder %s986_s17, 3 }
  0x10   : > { %s1610_s19 = smov (%p32_p0, %s31_s19), 0  ;;  %s1612_s20 = smov (!%p32_p0, %s34_s20), %s1256_s15 }
  0x11   : > { %1584 = sst [smem:[#allocation13_spill]] %s1610_s19  ;;  %p1370_p3 = por %p281_p2, %p280_p1 }
  0x12   : > { %p286_p4 = scmp.ne.s32.totalorder %s1236_s10, %s1232_s30  ;;  %p36_p5 = scmp.ge.s32.totalorder %s1612_s20, 2 }
  0x13   : > { %s1585_s21 = scalar_select %p1370_p3, 1, 0 }
  0x14   : > { %p287_p6 = scmp.eq.s32.totalorder %s987_s18, 3  ;;  %p990_p7 = scmp.ge.s32.totalorder %s1260_s16, 1 }
  0x15   : > { %1586 = sst [smem:[#allocation14_spill]] %s1585_s21  ;;  %p367_p8 = scmp.lt.s32.totalorder %s1260_s16, 5 }
  0x16   : > { %s1614_s20 = smov (%p36_p5, %s1612_s20), 0  ;;  %p1380_p9 = por %p287_p6, %p286_p4 }
  0x17   : > { %1587 = sst [smem:[#allocation15_spill]] %s1614_s20  ;;  %p368_p10 = pnand %p990_p7, %p367_p8 }
  0x18   : > { %s1588_s22 = scalar_select %p1380_p9, 1, 0 }
  0x19   : > { %s267_s23 = ssub.s32 %s1256_s15, %s1614_s20  ;;  %s270_s24 = sadd.s32 1, %s1240_s11 }
  0x1a   : > { %1589 = sst [smem:[#allocation16_spill]] %s1588_s22  ;;  %p268_p11 = scmp.eq.s32.totalorder %s267_s23, 0 }
  0x1b   : > { %371 = sbr.rel (%p368_p10) target bundleno = 1940 (0x794), region = 56  ;;  %s1566_s26 = sand.u32 (!%p368_p10), 1, %s1236_s10  }
  0x1c   : > { %s1388_s25 = scalar_select %p268_p11, %s1240_s11, %s270_s24  }
  0x1d   : > { %p433_p12 = scmp.lt.s32.totalorder (!%p368_p10), %s1248_s13, 1  ;;  %s991_s27 = sshll.u32 (!%p368_p10), %s1566_s26, 3 }
  0x1e   : > { %1590 = sst [smem:[#allocation17_spill]] %s1388_s25  ;;  %p437_p13 = scmp.lt.s32.totalorder (!%p368_p10), %s1244_s12, 1 }
  0x1f   : > { %s1591_s0 = sld [smem:[#allocation18_spill]] (!%p368_p10)  ;;  %p1003_p0 = scmp.ne.s32.totalorder (!%p368_p10), %s1244_s12, 0 }
  0x20   : > { %s434_s28 = scalar_select %p433_p12, %s1248_s13, 1 }
  0x21   : > { %s1397_s29 = scalar_select %p437_p13, %s1244_s12, 1 }
  0x22   : > { %s992_s17 = sshll.u32 %s434_s28, 3  ;;  %s1592_s1 = sld [smem:[#allocation19_spill]] }
  0x23   : > { %s1049_s20 = sshll.u32 %s1397_s29, 6  ;;  %s995_s14 = sshll.u32 %s1397_s29, 2 }
  0x24   : > { %s1593_s2 = sld [smem:[#allocation20_spill]]  ;;  %s1050_s30 = sshll.u32 %s1397_s29, 4 }
  0x25   : > { %s436_s24 = scalar_lea.vmem %s1591_s0, %s992_s17  ;;  %s1594_s3 = sld [smem:[#allocation21_spill]] }
  0x26   : > { %s1423_s23 = scalar_lea.vmem %s1558_s4, %s1050_s30  ;;  %s1052_s0 = sshll.u32 %s1397_s29, 5 }
  0x27   : > { %s1002_s25 = sshll.u32 %s1397_s29, 3  ;;  %472 = sbr.rel (%p1003_p0) target bundleno = 314 (0x13a), region = 60 }
  0x28   : > { %s1406_s26 = scalar_lea.vmem %s1592_s1, %s1049_s20  ;;  %s458_s20 = scalar_lea.vmem %s1559_s5, %s1397_s29 }
  0x29   : > { %s1439_s21 = scalar_lea.vmem %s1561_s7, %s1002_s25 }
  0x2a   : > { %s1412_s22 = scalar_lea.vmem %s1593_s2, %s995_s14  ;;  %s1433_s14 = scalar_lea.vmem %s1560_s6, %s1052_s0 }
  0x2b   : > { %s1418_s28 = scalar_lea.vmem %s1594_s3, %s1050_s30  ;;  %s1441_s3 = scalar_lea.vmem [#allocation5], %s991_s27 }
  0x2c   : > { %v473_v0 = vld [vmem:[%s436_s24] sm:$0xff]  ;;  %vm475_vm0 = vcmask 261120   ;;  %v1266_v2 = vmov 32.0  }
  0x2d   : > { %v476_v1 = vsel %vm475_vm0, %v473_v0, 0.0  ;;  %1146 = vrcp.f32 %v1266_v2  ;;  %v474_v21 = vld [vmem:[%s1562_s8] sm:$0x3] }
  0x2e   : > { %477 = vadd.xlane.f32.xlu0 %v476_v1  ;;  %v505_v24 = vperm.slane %v474_v21, 0  ;;  %v507_v26 = vperm.slane %v474_v21, 1 }
  0x33   : > { %v1147_v3 = vpop.eup %1146 }
  0x34   : > { %v480_v4 = vmul.f32 32.0, %v1147_v3  ;;  %vm484_vm1 = vweird.f32 %v1147_v3 }
  0x36   : > { %v481_v5 = vsub.f32 1.0, %v480_v4 }
  0x38   : > { %v482_v6 = vmul.f32 %v1147_v3, %v481_v5 }
  0x3a   : > { %v483_v7 = vadd.f32 %v1147_v3, %v482_v6 }
  0x3c   : > { %v485_v8 = vsel %vm484_vm1, %v1147_v3, %v483_v7 }
  0xa1   : > { %v478_v9 = vpop.xlane.xlu0 %477 }
  0xa2   : > { %v486_v10 = vmul.f32 %v485_v8, %v478_v9 }
  0xa4   : > { %v487_v11 = vsub.f32 %v473_v0, %v486_v10 }
  0xa6   : > { %v488_v12 = vmul.f32 %v487_v11, %v487_v11 }
  0xa8   : > { %v489_v13 = vsel %vm475_vm0, %v488_v12, 0.0 }
  0xa9   : > { %490 = vadd.xlane.f32.xlu0 %v489_v13 }
 0x11c   : > { %v491_v14 = vpop.xlane.xlu0 %490 }
 0x11d   : > { %v492_v15 = vmul.f32 %v491_v14, %v485_v8 }
 0x11f   : > { %v493_v16 = vadd.f32 1e-05, %v492_v15 }
 0x121   : > { %1148 = vrsqrt.f32 %v493_v16  ;;  %vm500_vm3 = vweird.f32 %v493_v16 }
 0x127   : > { %v1149_v17 = vpop.eup %1148 }
 0x128   : > { %v495_v18 = vmul.f32 %v1149_v17, %v493_v16  ;;  %vm501_vm2 = vweird.f32 %v1149_v17 }
 0x129   : > { %vm502_vm4 = vmor %vm500_vm3, %vm501_vm2 }
 0x12a   : > { %v496_v19 = vmul.f32 %v1149_v17, %v495_v18 }
 0x12c   : > { %v497_v20 = vmul.f32 0.5, %v496_v19 }
 0x12e   : > { %v498_v22 = vsub.f32 1.5, %v497_v20 }
 0x130   : > { %v499_v23 = vmul.f32 %v1149_v17, %v498_v22 }
 0x132   : > { %v503_v25 = vsel %vm502_vm4, %v1149_v17, %v499_v23 }
 0x133   : > { %v504_v27 = vmul.f32 %v503_v25, %v487_v11 }
 0x135   : > { %v506_v28 = vmul.f32 %v505_v24, %v504_v27 }
 0x137   : > { %v508_v29 = vadd.f32 %v507_v26, %v506_v28 }
 0x139   : > { %509 = vst.msk [vmem:[%s1441_s3] sm:$0xff] %vm475_vm0, %v508_v29 }
 0x13a PF: > { %vm512_vm5 = vcmask 257024   ;;  %v1455_v31 = vld [vmem:[%s1439_s21] sm:$0x3f]  ;;  %vm515_vm6 = vcmask 261120   ;;  %v1267_v33 = vmov 0.0   ;;  %s1460_s2 = smov 0  }
 0x13b   : > { %516 = vst.msk [vmem:[#allocation4] sm:$0xff] %vm515_vm6, %v1267_v33 }
 0x140   : > { %v1452_v30 = vld [vmem:[%s1441_s3] sm:$0xff] }
 0x141   : > { %v511_v32 = vpack.c.bf16 %v1452_v30, %v1452_v30 }
 0x143   : > { %513 = vst.msk [vmem:[#allocation2] sm:$0xf] %vm512_vm5, %v511_v32 }
 0x144 LB: >> { %s1053_s30 = sshll.u32 %s1264_s2, 4  ;;  %s531_s12 = scalar_lea.vmem %s1412_s22, %s1264_s2  ;;  %vm565_vm7 = vcmask 191488   ;;  %vm576_vm8 = vcmask 64512   ;;  %vm612_vm9 = vcmask 1043456   ;;  %v630_v2 = vld [vmem:[#allocation4] sm:$0xff]  ;;  %s1264_s2 = sphi %s1460_s2, %s522_s2  }
 0x145   : >> { %s525_s27 = scalar_lea.vmem %s1406_s26, %s1053_s30  ;;  %v1150_v37 = vld [vmem:[%s531_s12] ss:$0 sm:$0xff]  ;;  %s1268_s24 = smov 112  }
 0x146   : >> { %v1055_v34 = vld [vmem:[%s525_s27 + $0x8] sm:$0xff]  ;;  %v1054_v35 = vld [vmem:[%s525_s27] sm:$0xff]  ;;  %s1269_s18 = smov 120   ;;  %s1015_s17 = sshll.u32 %s1264_s2, 2 }
 0x147   : >> { %557 = vmatpush.bf16.msra.mxu0 %v1055_v34  ;;  %s568_s15 = scalar_lea.vmem %s1418_s28, %s1015_s17  ;;  %s522_s2 = sadd.s32 1, %s1264_s2  }
 0x148   : >> { %v569_v58 = vld [vmem:[%s568_s15] sm:$0xf]  ;;  %p519_p1 = scmp.ge.s32.totalorder %s522_s2, 4  }
 0x149   : >> { %v636_v59 = vsel %vm612_vm9, %v569_v58, 0  ;;  %v654_v7 = vperm.slane (%p519_p1), %v1455_v31, 0  ;;  %v1270_v11 = vmov (%p519_p1), 32.0   ;;  %v1057_v23 = vld [vmem:[%s1423_s23 + $0x8] sm:$0xff] (%p519_p1)  ;;  %v1056_v24 = vld [vmem:[%s1423_s23] sm:$0xff] (%p519_p1)  ;;  %v1061_v25 = vld [vmem:[%s1433_s14 + $0x18] sm:$0xff] (%p519_p1) }
 0x14a   : >> { %v530_v36 = vld [vmem:[#allocation2] sm:$0xf]  ;;  %645 = vmatpush.bf16.msra.mxu3 %v636_v59  ;;  %v1060_v28 = vld [vmem:[%s1433_s14 + $0x10] sm:$0xff] (%p519_p1)  ;;  %vm763_vm14 = vcmask (%p519_p1), 523264   ;;  %s1046_s29 = sshll.u32 (%p519_p1), %s1248_s13, 3  ;;  %s822_s11 = sshll.u32 (%p519_p1), %s1441_s3, 4  ;;  %s823_s11 = int_to_ptr.vmem [resolvable:$true] %s822_s11 }
 0x14b   : >> { %558 = vmatpush.bf16.msra.mxu0 %v1054_v35  ;;  %s820_s19 = scalar_lea.hbm (%p519_p1), %s1563_s9, %s1046_s29  ;;  %s1596_s13 = sand.u32 (%p519_p1), 1, %s1236_s10  }
 0x14c   : > { %s810_s25 = scalar_lea.sflag (%p519_p1), [#allocation6], %s1596_s13  ;;  %s1182_s2 = scalar_lea.hbm (%p519_p1), %s1563_s9, 16 }
 0x14e   : >> { %1014 = vmatmul.msk.bf16.vlgmr.msra.gmra.mxu0 %vm515_vm6, %v530_v36 }
 0x14f   : > { %722 = vmatpush.bf16.msra.mxu0 (%p519_p1), %v1057_v23 }
 0x153   : > { %723 = vmatpush.bf16.msra.mxu0 (%p519_p1), %v1056_v24 }
 0x1cb   : >> { %v560_v38 = vpop.f32.mrf.mxu0 }
 0x1cc   : >> { %v561_v39 = vadd.f32 %v1150_v37, %v560_v38  ;;  %v686_v37 = vperm.slane (%p519_p1), %v1455_v31, 2 }
 0x1ce   : >> { %v564_v40 = vpack.c.bf16 %v561_v39, %v561_v39 }
 0x1d0   : >> { %566 = vst.msk [vmem:[#allocation3] sm:$0xf] %vm565_vm7, %v564_v40  ;;  %v688_v40 = vperm.slane (%p519_p1), %v1455_v31, 3 }
 0x1d3   : >> { %v562_v41 = vpop.f32.mrf.mxu0 }
 0x1d7   : >> { %v570_v42 = vld [vmem:[#allocation3] sm:$0xf] }
 0x1d8   : >> { %v572_v43 = vunpack.c.l.b16 %v570_v42 }
 0x1da   : >> { %v573_v44 = vpack.c.b16 %v572_v43, %v572_v43 }
 0x1dc   : >> { %607 = vrot.lane.b32.xlu1 %v573_v44, %s1268_s24  ;;  %574 = vrot.lane.b32.xlu0 %v573_v44, %s1269_s18  ;;  %v1059_v44 = vld [vmem:[%s1433_s14 + $0x8] sm:$0xff] (%p519_p1) }
 0x24e   : >> { %v608_v45 = vpop.permute.xlu1 %607  ;;  %v575_v46 = vpop.permute.xlu0 %574 }
 0x24f   : >> { %v581_v47 = vsel %vm576_vm8, %v575_v46, 0  ;;  %v614_v48 = vsel %vm612_vm9, %v608_v45, 0  ;;  %v1058_v45 = vld [vmem:[%s1433_s14] sm:$0xff] (%p519_p1)  ;;  %s824_s14 = sshll.u32 (%p519_p1), %s820_s19, 4  ;;  %s825_s14 = int_to_ptr.hbm [resolvable:$true] %s824_s14 }
 0x250   : >> { %590 = vmatpush.bf16.xpose.msra.mxu1 %v581_v47  ;;  %623 = vmatpush.bf16.msra.mxu2 %v614_v48  ;;  %v1155_v46 = vld [vmem:[%s458_s20] ss:$0 sm:$0xff] (%p519_p1)  ;;  %s1176_s16 = sshra.s32 (%p519_p1), %s825_s14, 4  ;;  %s1177_s16 = int_to_ptr.hbm [resolvable:$true] %s1176_s16 }
 0x251   : > { %s1178_s21 = scalar_lea.hbm (%p519_p1), %s1177_s16, 8  ;;  %p1183_p6 = scmp.lt.s32.totalorder (%p519_p1), %s1177_s16, %s1563_s9 }
 0x252   : > { %p1179_p2 = scmp.ne.s32.totalorder (%p519_p1), %s1177_s16, %s1178_s21  ;;  %p1184_p7 = scmp.lt.s32.totalorder (%p519_p1), %s1182_s2, %s1178_s21 }
 0x254   : > { %p1180_p4 = pnand (%p519_p1), %p1179_p2, %p1370_p3  ;;  %p1185_p8 = por (%p519_p1), %p1184_p7, %p1183_p6 }
 0x256   : > { %p1181_p5 = pneg (%p519_p1), %p1180_p4 }
 0x257   : >> { %1016 = vmatmul.msk.bf16.vlgmr.msra.gmra.mxu1 %vm576_vm8, %v570_v42 }
 0x258   : > { %771 = vmatpush.bf16.msra.mxu1 (%p519_p1), %v1061_v25  ;;  %p1186_p10 = pnand (%p519_p1), %p1185_p8, %p1181_p5 }
 0x25c   : > { %772 = vmatpush.bf16.msra.mxu1 (%p519_p1), %v1060_v28 }
 0x260   : > { %773 = vmatpush.bf16.msra.mxu1 (%p519_p1), %v1059_v44 }
 0x264   : > { %774 = vmatpush.bf16.msra.mxu1 (%p519_p1), %v1058_v45 }
 0x2d4   : >> { %v592_v49 = vpop.f32.mrf.mxu1 }
 0x2d5   : >> { %v596_v50 = vsel %vm576_vm8, %v592_v49, -inf }
 0x2d6   : >> { %597 = vmax.xlane.f32.xlu0 %v596_v50 }
 0x2dc   : >> { %v594_v51 = vpop.f32.mrf.mxu1 }
 0x349   : >> { %v598_v52 = vpop.xlane.xlu0 %597 }
 0x34a   : >> { %v599_v53 = vsub.f32 %v592_v49, %v598_v52  ;;  %v691_v52 = vperm.slane (%p519_p1), %v1455_v31, 1 }
 0x34c   : >> { %v600_v54 = vmul.f32 1.442695, %v599_v53 }
 0x34e   : >> { %1151 = vpow2.f32 %v600_v54 }
 0x354   : >> { %v1152_v55 = vpop.eup %1151 }
 0x355   : >> { %v602_v56 = vsel %vm576_vm8, %v1152_v55, 0.0  ;;  %v606_v57 = vpack.c.bf16 %v1152_v55, %v1152_v55 }
 0x356   : >> { %603 = vadd.xlane.f32.xlu1 %v602_v56 }
 0x357   : >> { %1017 = vmatmul.msk.bf16.vlgmr.msra.gmra.mxu2 %vm576_vm8, %v606_v57 }
 0x3c9   : >> { %v604_v60 = vpop.xlane.xlu1 %603 }
 0x3ca   : >> { %1153 = vrcp.f32 %v604_v60 }
 0x3cb   : > { %1156 = vrcp.f32 (%p519_p1), %v1270_v11  ;;  %v806_v11 = vperm.slane (%p519_p1), %v1455_v31, 5 }
 0x3d0   : >> { %v1154_v61 = vpop.eup %1153 }
 0x3d1   : > { %v1157_v12 = vpop.eup (%p519_p1), %1156 }
 0x3d2   : > { %v661_v13 = vmul.f32 (%p519_p1), 32.0, %v1157_v12  ;;  %vm665_vm10 = vweird.f32 (%p519_p1), %v1157_v12 }
 0x3d4   : > { %v662_v14 = vsub.f32 (%p519_p1), 1.0, %v661_v13 }
 0x3d6   : > { %v663_v15 = vmul.f32 (%p519_p1), %v1157_v12, %v662_v14 }
 0x3d8   : > { %v664_v16 = vadd.f32 (%p519_p1), %v1157_v12, %v663_v15 }
 0x3da   : >> { %v625_v62 = vpop.f32.mrf.mxu2  ;;  %v666_v17 = vsel (%p519_p1), %vm665_vm10, %v1157_v12, %v664_v16 }
 0x3db   : >> { %v629_v63 = vmul.f32 %v1154_v61, %v625_v62 }
 0x3dd   : >> { %v631_v0 = vpack.c.bf16 %v629_v63, %v629_v63 }
 0x3df   : >> { %1018 = vmatmul.msk.bf16.vlgmr.msra.gmra.mxu3 %vm576_vm8, %v631_v0 }
 0x3e2   : >> { %v627_v1 = vpop.f32.mrf.mxu2 }
 0x462   : >> { %v647_v3 = vpop.f32.mrf.mxu3 }
 0x463   : >> { %v651_v4 = vadd.f32 %v647_v3, %v630_v2 }
 0x465   : >> { %652 = vst.msk [vmem:[#allocation4] sm:$0xff] %vm515_vm6, %v651_v4 }
 0x46a   : >> { %v649_v5 = vpop.f32.mrf.mxu3  ;;  %521 = sbr.rel (!%p519_p1) target bundleno = 324 (0x144), region = 126 }
 0x46c   : > { %v653_v6 = vld [vmem:[#allocation4] sm:$0xff] (%p519_p1) }
 0x46d   : > { %v655_v8 = vadd.f32 (%p519_p1), %v654_v7, %v653_v6 }
 0x46f   : > { %v656_v9 = vadd.f32 %v655_v8, %v1452_v30  ;;  %v804_v8 = vperm.slane %v1455_v31, 4 }
 0x471   : > { %v657_v10 = vsel %vm515_vm6, %v656_v9, 0.0 }
 0x472   : > { %658 = vadd.xlane.f32.xlu0 %v657_v10 }
 0x4e5   : > { %v659_v18 = vpop.xlane.xlu0 %658 }
 0x4e6   : > { %v667_v19 = vmul.f32 %v666_v17, %v659_v18 }
 0x4e8   : > { %v668_v20 = vsub.f32 %v656_v9, %v667_v19 }
 0x4ea   : > { %v669_v21 = vmul.f32 %v668_v20, %v668_v20 }
 0x4ec   : > { %v670_v22 = vsel %vm515_vm6, %v669_v21, 0.0 }
 0x4ed   : > { %671 = vadd.xlane.f32.xlu0 %v670_v22 }
 0x560   : > { %v672_v26 = vpop.xlane.xlu0 %671 }
 0x561   : > { %v673_v27 = vmul.f32 %v672_v26, %v666_v17 }
 0x563   : > { %v674_v29 = vadd.f32 1e-05, %v673_v27 }
 0x565   : > { %1158 = vrsqrt.f32 %v674_v29  ;;  %vm681_vm12 = vweird.f32 %v674_v29 }
 0x56b   : > { %v1159_v30 = vpop.eup %1158 }
 0x56c   : > { %v676_v32 = vmul.f32 %v1159_v30, %v674_v29  ;;  %vm682_vm11 = vweird.f32 %v1159_v30 }
 0x56d   : > { %vm683_vm13 = vmor %vm681_vm12, %vm682_vm11 }
 0x56e   : > { %v677_v33 = vmul.f32 %v1159_v30, %v676_v32 }
 0x570   : > { %v678_v34 = vmul.f32 0.5, %v677_v33 }
 0x572   : > { %v679_v35 = vsub.f32 1.5, %v678_v34 }
 0x574   : > { %v680_v36 = vmul.f32 %v1159_v30, %v679_v35 }
 0x576   : > { %v684_v38 = vsel %vm683_vm13, %v1159_v30, %v680_v36 }
 0x577   : > { %v685_v39 = vmul.f32 %v684_v38, %v668_v20 }
 0x579   : > { %v687_v41 = vmul.f32 %v686_v37, %v685_v39 }
 0x57b   : > { %v689_v42 = vadd.f32 %v688_v40, %v687_v41 }
 0x57d   : > { %v690_v43 = vpack.c.bf16 %v689_v42, %v689_v42 }
 0x57f   : > { %1027 = vmatmul.msk.bf16.vlgmr.msra.gmra.mxu0 %vm515_vm6, %v690_v43 }
 0x5fc   : > { %v725_v47 = vpop.f32.mrf.mxu0 }
 0x5fd   : > { %v726_v48 = vadd.f32 %v1155_v46, %v725_v47 }
 0x5ff   : > { %v729_v49 = vmax.f32 %v726_v48, 0.0 }
 0x601   : > { %v730_v50 = vpack.c.bf16 %v729_v49, %v729_v49 }
 0x603   : > { %1044 = vmatmul.msk.bf16.vlgmr.msra.gmra.mxu1 %vm763_vm14, %v730_v50 }
 0x604   : > { %v727_v51 = vpop.f32.mrf.mxu0 }
 0x680   : > { %v776_v53 = vpop.f32.mrf.mxu1 }
 0x681   : > { %v780_v54 = vadd.f32 %v776_v53, %v691_v52 }
 0x683   : > { %v781_v55 = vadd.f32 %v780_v54, %v689_v42 }
 0x685   : > { %v782_v56 = vsel %vm515_vm6, %v781_v55, 0.0 }
 0x686   : > { %783 = vadd.xlane.f32.xlu1 %v782_v56 }
 0x688   : > { %v778_v57 = vpop.f32.mrf.mxu1 }
 0x6f9   : > { %v784_v58 = vpop.xlane.xlu1 %783 }
 0x6fa   : > { %v785_v59 = vmul.f32 %v784_v58, %v666_v17 }
 0x6fc   : > { %v786_v60 = vsub.f32 %v781_v55, %v785_v59 }
 0x6fe   : > { %v787_v61 = vmul.f32 %v786_v60, %v786_v60 }
 0x700   : > { %v788_v62 = vsel %vm515_vm6, %v787_v61, 0.0 }
 0x701   : > { %789 = vadd.xlane.f32.xlu1 %v788_v62 }
 0x774   : > { %v790_v63 = vpop.xlane.xlu1 %789 }
 0x775   : > { %v791_v0 = vmul.f32 %v790_v63, %v666_v17 }
 0x777   : > { %v792_v1 = vadd.f32 1e-05, %v791_v0 }
 0x779   : > { %1160 = vrsqrt.f32 %v792_v1  ;;  %vm799_vm0 = vweird.f32 %v792_v1 }
 0x77f   : > { %v1161_v2 = vpop.eup %1160 }
 0x780   : > { %v794_v3 = vmul.f32 %v1161_v2, %v792_v1  ;;  %vm800_vm15 = vweird.f32 %v1161_v2 }
 0x781   : > { %vm801_vm1 = vmor %vm799_vm0, %vm800_vm15 }
 0x782   : > { %v795_v4 = vmul.f32 %v1161_v2, %v794_v3 }
 0x784   : > { %v796_v5 = vmul.f32 0.5, %v795_v4 }
 0x786   : > { %v797_v6 = vsub.f32 1.5, %v796_v5 }
 0x788   : > { %v798_v7 = vmul.f32 %v1161_v2, %v797_v6 }
 0x78a   : > { %v802_v9 = vsel %vm801_vm1, %v1161_v2, %v798_v7 }
 0x78b   : > { %v803_v10 = vmul.f32 %v802_v9, %v786_v60 }
 0x78d   : > { %v805_v12 = vmul.f32 %v804_v8, %v803_v10 }
 0x78f   : > { %v807_v13 = vadd.f32 %v806_v11, %v805_v12 }
 0x791   : > { %808 = vst.msk [vmem:[%s1441_s3] sm:$0xff] %vm515_vm6, %v807_v13 }
 0x792   : > { %1189 = shalt.err (!%p1186_p10)
}
 0x793   : > { %1062 = dma.vmem_to_hbm [thread:$0]  (%p1370_p3), %s823_s11, 128, %s825_s14, %s810_s25  }
 0x794 PF: > { %s1597_s3 = sld [smem:[#allocation12_spill]] }
 0x795   : > { %s1598_s27 = sld [smem:[#allocation8_spill]] }
 0x79a   : > { %p1068_p11 = scmp.ge.s32.totalorder %s1597_s3, 2 }
 0x79b   : > { %s836_s18 = sand.u32 1, %s1598_s27  }
 0x79c   : > { %p1065_p12 = pnand %p1068_p11, %p1380_p9  ;;  %s837_s17 = scalar_lea.sflag [#allocation6], %s836_s18 }
 0x79e   : > { %p1066_p13 = pneg %p1065_p12 }
 0x7a0   : > { %1227 = dma.done.wait (%p1066_p13), %s837_s17, 128  }
 0x7a1   : > { %1229 = vsyncadd (%p1066_p13), %s837_s17, 4294967168  ;;  %s22_s16 = sadd.s32 1, %s1597_s3   ;;  %s1600_s15 = sld [smem:[#allocation9_spill]] }
 0x7a2   : > { %p19_p0 = scmp.ge.s32.totalorder %s22_s16, 6   ;;  %s1601_s11 = sld [smem:[#allocation17_spill]] }
 0x7a3   : > { %s1602_s12 = sld [smem:[#allocation10_spill]]  ;;  %s1606_s30 = smov %s1236_s10 }
 0x7a4   : > { %s1603_s13 = sld [smem:[#allocation11_spill]] }
 0x7a5   : > { %s1604_s14 = sld [smem:[#allocation13_spill]] }
 0x7a6   : > { %s1605_s22 = sld [smem:[#allocation15_spill]] }
 0x7a7   : > { %s1607_s10 = smov %s1600_s15 }
 0x7a8   :  { %21 = sbr.rel (!%p19_p0) target bundleno = 10 (0xa), region = 137 }
 0x7ac   : > { %s1608_s15 = smov %s1605_s22 }
 0x7ad   :  { %843 = vsyncpa [#allocation6], 1 }
 0x7ae   :  { %845 = vsyncpa [#allocation6 + $0x1], 1 }

</bundles_post_ra>
